<compile_context>
chip_gen: v6e
topology: v6e:2x2x1
jax: 0.10.0
libtpu: 0.0.40
codegen_flags: <defaults>
</compile_context>

<pallas_src>
import functools
import math

import jax
import jax.numpy as jnp
from jax.experimental import pallas as pl
from jax.experimental.pallas import tpu as pltpu

LANES = 128                 # lane width (last dim of every vreg)
SUBLANES = 8                # f32 sublane granularity
MAX_TILE_M = 8192           # rows per block -> 8192 * 128 * 4 B = 4 MiB per input
ACC_ROWS = 64               # resident accumulator rows (8 independent vreg chains)
INPUT_BUFFER_COUNT = 3      # triple-buffer the input stream (hides DMA jitter)
VMEM_LIMIT_BYTES = 48 * 1024 * 1024   # 2 inputs x 3 bufs x 4 MiB = 24 MiB + temps


def _num_tensorcores_per_chip():
    """Best-effort TensorCores-per-chip = width of the 'parallel' grid axis.

    Over-counting only adds a serial grid iteration on 1-TC chips (and the
    wrapper also clamps to the number of blocks), so correctness never depends
    on this heuristic.
    """
    try:
        kind = jax.devices()[0].device_kind.lower()
    except Exception:
        return 1
    # v5e / v6e expose a single TensorCore per chip.
    if "lite" in kind or "v5e" in kind or "v6e" in kind:
        return 1
    return 2  # v4 / v5p megacore, v7x


def _focal_terms(x, t, *, binary_targets):
    """Per-element (1 - pt)^2 * bce (gamma == 2; alpha applied by the caller)."""
    e = jnp.exp(-jnp.abs(x))                              # EUP transcendental #1
    bce = jnp.maximum(x, 0.0) - x * t + jnp.log1p(e)      # EUP transcendental #2
    if binary_targets:
        # pt = exp(-bce) = exp(x*t - max(x,0)) / (1 + e).  For t in {0, 1} the
        # numerator is exactly 1 or e depending on sign(x) and t -> a pure
        # select, saving the third transcendental (keeps v7x on the HBM
        # roofline).  Nested selects avoid any bool-bool compare in lowering.
        t_pos = t > 0.5
        num = jnp.where(x >= 0.0,
                        jnp.where(t_pos, 1.0, e),
                        jnp.where(t_pos, e, 1.0))
        pt = num / (1.0 + e)
    else:
        pt = jnp.exp(-bce)                                # exact for soft targets
    d = 1.0 - pt
    return (d * d) * bce                                  # gamma == 2: d*d, not pow


def _focal_loss_sum_kernel(x_ref, t_ref, out_ref, *, rows, tile_m, steps,
                           acc_rows, binary_targets):
    j = pl.program_id(0)   # TensorCore split axis ("parallel")
    i = pl.program_id(1)   # sequential accumulation axis ("arbitrary")

    @pl.when(i == 0)
    def _init():
        out_ref[...] = jnp.zeros_like(out_ref)

    x = x_ref[...].astype(jnp.float32)
    t = t_ref[...].astype(jnp.float32)
    f = _focal_terms(x, t, binary_targets=binary_targets)     # (tile_m, LANES)

    def _accumulate(v):
        # Fold rows into the resident (acc_rows, LANES) accumulator: acc_rows/8
        # independent vreg add chains (pure VPU adds, no cross-lane reduce, no
        # single ~1000-deep dependent chain). Final fold happens in the wrapper.
        out_ref[0] += v.reshape(tile_m // acc_rows, acc_rows, LANES).sum(axis=0)

    block_start = (j * steps + i) * tile_m   # unclamped first row of this block

    @pl.when(block_start + tile_m <= rows)   # full in-range block: no mask work
    def _full():
        _accumulate(f)

    @pl.when(block_start + tile_m > rows)    # partial / duplicated (clamped) block
    def _edge():
        row = jax.lax.broadcasted_iota(jnp.int32, (tile_m, 1), 0)
        _accumulate(jnp.where(block_start + row < rows, f, 0.0))


def focal_loss(inputs, targets, alpha=0.25, gamma=2.0, reduction="mean",
               binary_targets=True, max_tile_m=MAX_TILE_M):
    """Pallas implementation of FocalLoss.forward (reduction 'mean' / 'sum').

    binary_targets=True enables the 2-transcendental fast path (exact when all
    targets are 0/1, which is the standard focal-loss use case); set it to
    False for soft targets to reproduce pt = exp(-bce) exactly.
    """
    assert inputs.shape == targets.shape
    # TODO(synk): general gamma needs a pow path in the kernel; gamma=2 only.
    assert gamma == 2.0
    # TODO(synk): reduction='none' (per-element loss map output) not implemented.
    assert reduction in ("mean", "sum")

    total = int(inputs.size)
    x = jnp.ravel(inputs)
    t = jnp.ravel(targets)

    chunk = SUBLANES * LANES                 # 1024-element vreg chunk
    main = (total // chunk) * chunk          # kernel part (no padded HBM copy)
    tail = total - main                      # < 1024 leftovers handled in JAX

    total_sum = jnp.float32(0.0)

    if main:
        rows = main // LANES                              # multiple of SUBLANES
        tile_m = min(rows, max_tile_m)
        acc_rows = math.gcd(tile_m, ACC_ROWS)             # divides tile_m, mult of 8
        num_blocks = pl.cdiv(rows, tile_m)
        num_cores = max(1, min(_num_tensorcores_per_chip(), num_blocks))
        steps = pl.cdiv(num_blocks, num_cores)

        x2 = x[:main].reshape(rows, LANES)
        t2 = t[:main].reshape(rows, LANES)

        def in_map(j, i):
            # Clamp so duplicated grid points (odd block count split across the
            # core axis) never address out-of-range blocks; their contribution
            # is masked to zero inside the kernel.
            return (jnp.minimum(j * steps + i, num_blocks - 1), 0)

        def make_in_spec(buffer_count):
            if buffer_count is not None and hasattr(pl, "Buffered"):
                try:
                    return pl.BlockSpec((tile_m, LANES), in_map,
                                        pipeline_mode=pl.Buffered(buffer_count))
                except TypeError:   # BlockSpec without pipeline_mode support
                    pass
            return pl.BlockSpec((tile_m, LANES), in_map)

        def run(buffer_count):
            return pl.pallas_call(
                functools.partial(
                    _focal_loss_sum_kernel, rows=rows, tile_m=tile_m,
                    steps=steps, acc_rows=acc_rows,
                    binary_targets=binary_targets),
                out_shape=jax.ShapeDtypeStruct(
                    (num_cores, acc_rows, LANES), jnp.float32),
                grid_spec=pltpu.PrefetchScalarGridSpec(
                    num_scalar_prefetch=0,
                    grid=(num_cores, steps),
                    in_specs=[make_in_spec(buffer_count),
                              make_in_spec(buffer_count)],
                    out_specs=pl.BlockSpec((1, acc_rows, LANES),
                                           lambda j, i: (j, 0, 0)),
                ),
                compiler_params=pltpu.CompilerParams(
                    dimension_semantics=("parallel", "arbitrary"),
                    vmem_limit_bytes=VMEM_LIMIT_BYTES,
                ),
            )(x2, t2)

        try:
            partials = run(INPUT_BUFFER_COUNT)
        except Exception:   # fall back to the default 2-deep pipeline buffers
            partials = run(None)

        total_sum = total_sum + jnp.sum(partials)

    if tail:
        xt = x[main:].astype(jnp.float32)
        tt = t[main:].astype(jnp.float32)
        total_sum = total_sum + jnp.sum(
            _focal_terms(xt, tt, binary_targets=binary_targets))

    total_sum = jnp.float32(alpha) * total_sum   # alpha hoisted out of the hot loop
    if reduction == "sum":
        return total_sum
    return total_sum / jnp.float32(total)


def _focal_loss_ref(inputs, targets, alpha=0.25, gamma=2.0):
    x = inputs.astype(jnp.float32)
    t = targets.astype(jnp.float32)
    bce = jnp.maximum(x, 0.0) - x * t + jnp.log1p(jnp.exp(-jnp.abs(x)))
    pt = jnp.exp(-bce)
    return jnp.mean(alpha * (1.0 - pt) ** gamma * bce)


if __name__ == "__main__":
    key = jax.random.PRNGKey(0)
    k1, k2, k3, k4, k5, k6 = jax.random.split(key, 6)

    # Dense NCHW prediction map: (B, C, H, W) = (2, 4, 16, 16).
    shape = (2, 4, 16, 16)
    logits = jax.random.normal(k1, shape, dtype=jnp.float32)
    targets = (jax.random.uniform(k2, shape) > 0.5).astype(jnp.float32)

    loss = jax.block_until_ready(focal_loss(logits, targets))
    ref = _focal_loss_ref(logits, targets)
    assert jnp.allclose(loss, ref, rtol=1e-5, atol=1e-6), (loss, ref)

    # Soft-target fallback path (pt = exp(-bce) exactly) + <1024-element JAX tail.
    shape2 = (3, 5, 7, 11)                       # 1155 = 1024 kernel + 131 tail
    logits2 = jax.random.normal(k3, shape2, dtype=jnp.float32)
    soft_t = jax.random.uniform(k4, shape2, dtype=jnp.float32)
    loss2 = jax.block_until_ready(focal_loss(logits2, soft_t, binary_targets=False))
    ref2 = _focal_loss_ref(logits2, soft_t)
    assert jnp.allclose(loss2, ref2, rtol=1e-5, atol=1e-6), (loss2, ref2)

    # Multi-block grid with a partial (masked) edge block, forced via small tile.
    shape3 = (3, 4, 16, 16)                      # 3072 elements -> 24 rows of 128
    logits3 = jax.random.normal(k5, shape3, dtype=jnp.float32)
    targets3 = (jax.random.uniform(k6, shape3) > 0.5).astype(jnp.float32)
    loss3 = jax.block_until_ready(focal_loss(logits3, targets3, max_tile_m=16))
    ref3 = _focal_loss_ref(logits3, targets3)
    assert jnp.allclose(loss3, ref3, rtol=1e-5, atol=1e-6), (loss3, ref3)

    print("KERNEL_OK")
</pallas_src>

<mosaic_0001>
module attributes {stable_mosaic.version = 11 : i64} {
  func.func @_focal_loss_sum_kernel(%arg0: i32, %arg1: i32, %arg2: memref<16x128xf32, #tpu.memory_space<vmem>>, %arg3: memref<16x128xf32, #tpu.memory_space<vmem>>, %arg4: memref<1x16x128xf32, #tpu.memory_space<vmem>>) attributes {dimension_semantics = [#tpu.dimension_semantics<parallel>, #tpu.dimension_semantics<arbitrary>], iteration_bounds = array<i64: 1, 1>, scalar_prefetch = 0 : i64, scratch_operands = 0 : i64, tpu.core_type = #tpu.core_type<tc>, window_params = [{transform_indices = @transform_0, window_bounds = array<i64: 16, 128>}, {transform_indices = @transform_1, window_bounds = array<i64: 16, 128>}, {transform_indices = @transform_2, window_bounds = array<i64: 1, 16, 128>}]} {
    %c0_i32 = arith.constant 0 : i32
    %0 = arith.cmpi eq, %arg1, %c0_i32 : i32
    %1 = arith.extui %0 : i1 to i32
    %c0_i32_0 = arith.constant 0 : i32
    %2 = arith.cmpi ne, %1, %c0_i32_0 : i32
    scf.if %2 {
      %cst_17 = arith.constant 0.000000e+00 : f32
      %42 = vector.broadcast %cst_17 : f32 to vector<1x16x128xf32>
      %c0_18 = arith.constant 0 : index
      %c0_19 = arith.constant 0 : index
      %c0_20 = arith.constant 0 : index
      %43 = vector.load %arg4[%c0_18, %c0_19, %c0_20] : memref<1x16x128xf32, #tpu.memory_space<vmem>>, vector<1x16x128xf32>
      tpu.vector_store %arg4[%c0_18, %c0_19, %c0_20], %42 {strides = array<i32>} : memref<1x16x128xf32, #tpu.memory_space<vmem>>, vector<1x16x128xf32>,
    } else {
    }
    %c0 = arith.constant 0 : index
    %c0_1 = arith.constant 0 : index
    %3 = vector.load %arg2[%c0, %c0_1] : memref<16x128xf32, #tpu.memory_space<vmem>>, vector<16x128xf32>
    %c0_2 = arith.constant 0 : index
    %c0_3 = arith.constant 0 : index
    %4 = vector.load %arg3[%c0_2, %c0_3] : memref<16x128xf32, #tpu.memory_space<vmem>>, vector<16x128xf32>
    %5 = math.absf %3 : vector<16x128xf32>
    %cst = arith.constant 0.000000e+00 : f32
    %6 = vector.broadcast %cst : f32 to vector<16x128xf32>
    %7 = arith.subf %6, %5 : vector<16x128xf32>
    %8 = math.exp %7 : vector<16x128xf32>
    %cst_4 = arith.constant 0.000000e+00 : f32
    %9 = vector.broadcast %cst_4 : f32 to vector<16x128xf32>
    %10 = arith.maximumf %3, %9 : vector<16x128xf32>
    %11 = arith.mulf %3, %4 : vector<16x128xf32>
    %12 = arith.subf %10, %11 : vector<16x128xf32>
    %13 = math.log1p %8 : vector<16x128xf32>
    %14 = arith.addf %12, %13 : vector<16x128xf32>
    %cst_5 = arith.constant 5.000000e-01 : f32
    %15 = vector.broadcast %cst_5 : f32 to vector<16x128xf32>
    %16 = arith.cmpf ogt, %4, %15 : vector<16x128xf32>
    %cst_6 = arith.constant 0.000000e+00 : f32
    %17 = vector.broadcast %cst_6 : f32 to vector<16x128xf32>
    %18 = arith.cmpf oge, %3, %17 : vector<16x128xf32>
    %cst_7 = arith.constant 1.000000e+00 : f32
    %19 = vector.broadcast %cst_7 : f32 to vector<16x128xf32>
    %20 = arith.select %16, %19, %8 : vector<16x128xi1>, vector<16x128xf32>
    %cst_8 = arith.constant 1.000000e+00 : f32
    %21 = vector.broadcast %cst_8 : f32 to vector<16x128xf32>
    %22 = arith.select %16, %8, %21 : vector<16x128xi1>, vector<16x128xf32>
    %23 = arith.select %18, %20, %22 : vector<16x128xi1>, vector<16x128xf32>
    %cst_9 = arith.constant 1.000000e+00 : f32
    %24 = vector.broadcast %cst_9 : f32 to vector<16x128xf32>
    %25 = arith.addf %24, %8 : vector<16x128xf32>
    %26 = arith.divf %23, %25 : vector<16x128xf32>
    %cst_10 = arith.constant 1.000000e+00 : f32
    %27 = vector.broadcast %cst_10 : f32 to vector<16x128xf32>
    %28 = arith.subf %27, %26 : vector<16x128xf32>
    %29 = arith.mulf %28, %28 : vector<16x128xf32>
    %30 = arith.mulf %29, %14 : vector<16x128xf32>
    %c1_i32 = arith.constant 1 : i32
    %31 = arith.muli %arg0, %c1_i32 : i32
    %32 = arith.addi %31, %arg1 : i32
    %c16_i32 = arith.constant 16 : i32
    %33 = arith.muli %32, %c16_i32 : i32
    %c16_i32_11 = arith.constant 16 : i32
    %34 = arith.addi %33, %c16_i32_11 : i32
    %c16_i32_12 = arith.constant 16 : i32
    %35 = arith.cmpi sle, %34, %c16_i32_12 : i32
    %36 = arith.extui %35 : i1 to i32
    %c0_i32_13 = arith.constant 0 : i32
    %37 = arith.cmpi ne, %36, %c0_i32_13 : i32
    scf.if %37 {
      %c0_17 = arith.constant 0 : index
      %c0_18 = arith.constant 0 : index
      %c0_19 = arith.constant 0 : index
      %42 = vector.load %arg4[%c0_17, %c0_18, %c0_19] : memref<1x16x128xf32, #tpu.memory_space<vmem>>, vector<1x16x128xf32>
      %43 = vector.shape_cast %42 : vector<1x16x128xf32> to vector<16x128xf32>
      %44 = vector.shape_cast %30 : vector<16x128xf32> to vector<1x16x128xf32>
      %cst_20 = arith.constant dense<0.000000e+00> : vector<16x128xf32>
      %45 = vector.multi_reduction <add>, %44, %cst_20 [0] : vector<1x16x128xf32> to vector<16x128xf32>
      %46 = arith.addf %43, %45 : vector<16x128xf32>
      %c0_21 = arith.constant 0 : index
      %c0_22 = arith.constant 0 : index
      %c0_23 = arith.constant 0 : index
      %47 = vector.load %arg4[%c0_21, %c0_22, %c0_23] : memref<1x16x128xf32, #tpu.memory_space<vmem>>, vector<1x16x128xf32>
      %48 = vector.shape_cast %47 : vector<1x16x128xf32> to vector<16x128xf32>
      %49 = vector.shape_cast %46 : vector<16x128xf32> to vector<1x16x128xf32>
      tpu.vector_store %arg4[%c0_21, %c0_22, %c0_23], %49 {strides = array<i32>} : memref<1x16x128xf32, #tpu.memory_space<vmem>>, vector<1x16x128xf32>,
    } else {
    }
    %c16_i32_14 = arith.constant 16 : i32
    %38 = arith.addi %33, %c16_i32_14 : i32
    %c16_i32_15 = arith.constant 16 : i32
    %39 = arith.cmpi sgt, %38, %c16_i32_15 : i32
    %40 = arith.extui %39 : i1 to i32
    %c0_i32_16 = arith.constant 0 : i32
    %41 = arith.cmpi ne, %40, %c0_i32_16 : i32
    scf.if %41 {
      %42 = tpu.iota {dimensions = array<i32: 0>} : vector<16x1xi32>
      %43 = vector.broadcast %33 : i32 to vector<16x1xi32>
      %44 = arith.addi %43, %42 : vector<16x1xi32>
      %c16_i32_17 = arith.constant 16 : i32
      %45 = vector.broadcast %c16_i32_17 : i32 to vector<16x1xi32>
      %46 = arith.cmpi slt, %44, %45 : vector<16x1xi32>
      %cst_18 = arith.constant 0.000000e+00 : f32
      %47 = vector.shape_cast %46 : vector<16x1xi1> to vector<16x1xi1>
      %48 = vector.broadcast %47 : vector<16x1xi1> to vector<16x128xi1>
      %49 = vector.broadcast %cst_18 : f32 to vector<16x128xf32>
      %50 = arith.select %48, %30, %49 : vector<16x128xi1>, vector<16x128xf32>
      %c0_19 = arith.constant 0 : index
      %c0_20 = arith.constant 0 : index
      %c0_21 = arith.constant 0 : index
      %51 = vector.load %arg4[%c0_19, %c0_20, %c0_21] : memref<1x16x128xf32, #tpu.memory_space<vmem>>, vector<1x16x128xf32>
      %52 = vector.shape_cast %51 : vector<1x16x128xf32> to vector<16x128xf32>
      %53 = vector.shape_cast %50 : vector<16x128xf32> to vector<1x16x128xf32>
      %cst_22 = arith.constant dense<0.000000e+00> : vector<16x128xf32>
      %54 = vector.multi_reduction <add>, %53, %cst_22 [0] : vector<1x16x128xf32> to vector<16x128xf32>
      %55 = arith.addf %52, %54 : vector<16x128xf32>
      %c0_23 = arith.constant 0 : index
      %c0_24 = arith.constant 0 : index
      %c0_25 = arith.constant 0 : index
      %56 = vector.load %arg4[%c0_23, %c0_24, %c0_25] : memref<1x16x128xf32, #tpu.memory_space<vmem>>, vector<1x16x128xf32>
      %57 = vector.shape_cast %56 : vector<1x16x128xf32> to vector<16x128xf32>
      %58 = vector.shape_cast %55 : vector<16x128xf32> to vector<1x16x128xf32>
      tpu.vector_store %arg4[%c0_23, %c0_24, %c0_25], %58 {strides = array<i32>} : memref<1x16x128xf32, #tpu.memory_space<vmem>>, vector<1x16x128xf32>,
    } else {
    }
    return
  }
  func.func @transform_0(%arg0: i32, %arg1: i32) -> (i32, i32) {
    %c1_i32 = arith.constant 1 : i32
    %0 = arith.muli %arg0, %c1_i32 : i32
    %1 = arith.addi %0, %arg1 : i32
    %c0_i32 = arith.constant 0 : i32
    %2 = arith.minsi %1, %c0_i32 : i32
    %c0_i32_0 = arith.constant 0 : i32
    %c0_i32_1 = arith.constant 0 : i32
    return %2, %c0_i32_0 : i32, i32
  }
  func.func @transform_1(%arg0: i32, %arg1: i32) -> (i32, i32) {
    %c1_i32 = arith.constant 1 : i32
    %0 = arith.muli %arg0, %c1_i32 : i32
    %1 = arith.addi %0, %arg1 : i32
    %c0_i32 = arith.constant 0 : i32
    %2 = arith.minsi %1, %c0_i32 : i32
    %c0_i32_0 = arith.constant 0 : i32
    %c0_i32_1 = arith.constant 0 : i32
    return %2, %c0_i32_0 : i32, i32
  }
  func.func @transform_2(%arg0: i32, %arg1: i32) -> (i32, i32, i32) {
    %c0_i32 = arith.constant 0 : i32
    %c0_i32_0 = arith.constant 0 : i32
    %c0_i32_1 = arith.constant 0 : i32
    return %arg0, %c0_i32, %c0_i32_0 : i32, i32, i32
  }
}

</mosaic_0001>

<bundles_post_ra>
// kernel: tpu_custom_call.1
= control target key start
LH: loop header
LB: loop body
LE: loop exit
PB: predicated region body
PF: predicated region fallthrough
CT: control target
= control target key end

     0   :  { %7 = vsyncpa [#allocation3], 0  ;;  %s311_s0 = inlined_call_operand.hbm [shape: f32[16,128], index: 0, kind: input, shape index: {}]   ;;  %s312_s1 = inlined_call_operand.hbm [shape: f32[16,128], index: 1, kind: input, shape index: {}]   ;;  %s313_s2 = inlined_call_operand.hbm [shape: f32[1,16,128], index: 2, kind: output, shape index: {}]  }
   0x1   :  { %8 = vsyncpa [#allocation6], 0 }
   0x2   :  { %9 = vsyncpa [#allocation4], 0  ;;  %s273_s9 = smov [#allocation2]  }
   0x3   :  { %s21_s10 = sshll.u32 %s273_s9, 4  ;;  %s22_s10 = int_to_ptr.vmem [resolvable:$true] %s21_s10 }
   0x4   :  { %s215_s11 = scalar_lea.vmem %s22_s10, 256  ;;  %p220_p1 = scmp.lt.s32.totalorder %s22_s10, %s22_s10 }
   0x5   :  { %p216_p0 = scmp.ne.s32.totalorder %s22_s10, %s215_s11  ;;  %p221_p2 = scmp.lt.s32.totalorder %s215_s11, %s215_s11 }
   0x7   :  { %p222_p3 = por %p221_p2, %p220_p1 }
   0x9   :  { %p223_p4 = pnand %p222_p3, %p216_p0 }
   0xb   :  { %226 = shalt.err (!%p223_p4)
}
   0xc   :  { %s274_s12 = smov 128   ;;  %s275_s13 = smov 8  }
   0xd   :  { %27 = dma.hbm_to_vmem [thread:$0]  %s311_s0, 256, %s22_s10, [#allocation3], %s274_s12, %s274_s12, %s275_s13  }
   0xe   :  { %s276_s16 = smov [#allocation5]  }
   0xf   :  { %s39_s17 = sshll.u32 %s276_s16, 4  ;;  %s40_s17 = int_to_ptr.vmem [resolvable:$true] %s39_s17 }
  0x10   :  { %s235_s18 = scalar_lea.vmem %s40_s17, 256  ;;  %p240_p6 = scmp.lt.s32.totalorder %s40_s17, %s40_s17 }
  0x11   :  { %p236_p5 = scmp.ne.s32.totalorder %s40_s17, %s235_s18  ;;  %p241_p7 = scmp.lt.s32.totalorder %s235_s18, %s235_s18 }
  0x13   :  { %p242_p8 = por %p241_p7, %p240_p6 }
  0x15   :  { %p243_p9 = pnand %p242_p8, %p236_p5 }
  0x17   :  { %246 = shalt.err (!%p243_p9)
}
  0x18   :  { %45 = dma.hbm_to_vmem [thread:$0]  %s312_s1, 256, %s40_s17, [#allocation6], %s274_s12, %s274_s12, %s275_s13  }
  0x19   :  { %267 = dma.done.wait [#allocation3], 256  }
  0x1a   :  { %268 = vsyncadd [#allocation3], 4294967040 }
  0x1b   :  { %269 = dma.done.wait [#allocation6], 256  }
  0x1c   :  { %270 = vsyncadd [#allocation6], 4294967040  ;;  %v66_v0 = vld [vmem:[#allocation2] sm:$0xff]  ;;  %v67_v1 = vld [vmem:[#allocation2 + $0x8] sm:$0xff]  ;;  %s277_s0 = smov [#allocation7]  }
  0x1d   :  { %v70_v2 = vand.u32 2147483647, %v66_v0  ;;  %v71_v3 = vand.u32 2147483647, %v67_v1  ;;  %v68_v12 = vld [vmem:[#allocation5] sm:$0xff]  ;;  %v69_v14 = vld [vmem:[#allocation5 + $0x8] sm:$0xff] }
  0x1e   :  { %vm104_vm0 = vcmp.gt.f32.partialorder %v68_v12, 0.5  ;;  %v78_v16 = vmax.f32 %v66_v0, 0.0  ;;  %v80_v17 = vmul.f32 %v68_v12, %v66_v0  ;;  %vm105_vm1 = vcmp.gt.f32.partialorder %v69_v14, 0.5  ;;  %s172_s1 = sshll.u32 %s277_s0, 4  ;;  %s173_s1 = int_to_ptr.vmem [resolvable:$true] %s172_s1 }
  0x1f   :  { %v72_v4 = vsub.f32 0.0, %v70_v2  ;;  %v73_v5 = vsub.f32 0.0, %v71_v3  ;;  %vm106_vm2 = vcmp.ge.f32.partialorder %v66_v0, 0.0  ;;  %v79_v22 = vmax.f32 %v67_v1, 0.0  ;;  %s247_s21 = scalar_lea.vmem %s173_s1, 256  ;;  %p252_p11 = scmp.lt.s32.totalorder %s173_s1, %s173_s1 }
  0x20   :  { %v81_v23 = vmul.f32 %v69_v14, %v67_v1  ;;  %vm107_vm3 = vcmp.ge.f32.partialorder %v67_v1, 0.0  ;;  %v82_v31 = vsub.f32 %v78_v16, %v80_v17  ;;  %p248_p10 = scmp.ne.s32.totalorder %s173_s1, %s247_s21  ;;  %p253_p12 = scmp.lt.s32.totalorder %s247_s21, %s247_s21 }
  0x21   :  { %v74_v6 = vmul.f32 1.442695, %v72_v4  ;;  %v76_v7 = vmul.f32 1.442695, %v73_v5 }
  0x22   :  { %v83_v38 = vsub.f32 %v79_v22, %v81_v23  ;;  %p254_p13 = por %p253_p12, %p252_p11 }
  0x23   :  { %195 = vpow2.f32 %v74_v6 }
  0x24   :  { %197 = vpow2.f32 %v76_v7  ;;  %p255_p0 = pnand %p254_p13, %p248_p10 }
  0x30   :  { %v196_v8 = vpop.eup %195 }
  0x31   :  { %v198_v9 = vpop.eup %197  ;;  %v84_v10 = vadd.f32 1.0, %v196_v8  ;;  %v87_v13 = vmul.f32 -0.5, %v196_v8  ;;  %v90_v19 = vand.u32 2147483647, %v196_v8  ;;  %v108_v20 = vsel %vm104_vm0, 1.0, %v196_v8 }
  0x32   :  { %v93_v11 = vadd.f32 1.0, %v198_v9  ;;  %v96_v15 = vmul.f32 -0.5, %v198_v9  ;;  %v110_v21 = vsel %vm104_vm0, %v196_v8, 1.0  ;;  %v99_v25 = vand.u32 2147483647, %v198_v9 }
  0x33   :  { %199 = vlog2.f32 %v84_v10  ;;  %v88_v18 = vadd.f32 1.0, %v87_v13  ;;  %v109_v26 = vsel %vm105_vm1, 1.0, %v198_v9  ;;  %v111_v27 = vsel %vm105_vm1, %v198_v9, 1.0 }
  0x34   :  { %201 = vrcp.f32 %v84_v10  ;;  %v97_v24 = vadd.f32 1.0, %v96_v15  ;;  %v112_v29 = vsel %vm106_vm2, %v108_v20, %v110_v21  ;;  %vm91_vm4 = vcmp.lt.f32.partialorder %v90_v19, 0.0004427343 }
  0x35   :  { %203 = vlog2.f32 %v93_v11  ;;  %v89_v28 = vmul.f32 %v196_v8, %v88_v18  ;;  %v113_v35 = vsel %vm107_vm3, %v109_v26, %v111_v27  ;;  %vm100_vm5 = vcmp.lt.f32.partialorder %v99_v25, 0.0004427343 }
  0x36   :  { %205 = vrcp.f32 %v93_v11  ;;  %v98_v34 = vmul.f32 %v198_v9, %v97_v24 }
  0x40   :  { %v200_v30 = vpop.eup %199 }
  0x41   :  { %v202_v32 = vpop.eup %201  ;;  %v86_v33 = vmul.f32 0.6931472, %v200_v30 }
  0x42   :  { %v204_v36 = vpop.eup %203  ;;  %v117_v37 = vmul.f32 %v202_v32, %v112_v29 }
  0x43   :  { %v206_v39 = vpop.eup %205  ;;  %v92_v40 = vsel %vm91_vm4, %v89_v28, %v86_v33  ;;  %v95_v41 = vmul.f32 0.6931472, %v204_v36 }
  0x44   :  { %v102_v42 = vadd.f32 %v92_v40, %v82_v31  ;;  %v120_v43 = vsub.f32 1.0, %v117_v37  ;;  %v119_v44 = vmul.f32 %v206_v39, %v113_v35 }
  0x45   :  { %v101_v45 = vsel %vm100_vm5, %v98_v34, %v95_v41 }
  0x46   :  { %v122_v46 = vmul.f32 %v120_v43, %v120_v43  ;;  %v103_v47 = vadd.f32 %v101_v45, %v83_v38  ;;  %v121_v48 = vsub.f32 1.0, %v119_v44 }
  0x48   :  { %v124_v49 = vmul.f32 %v122_v46, %v102_v42  ;;  %v123_v50 = vmul.f32 %v121_v48, %v121_v48 }
  0x4a   :  { %v125_v51 = vmul.f32 %v123_v50, %v103_v47  ;;  %139 = vst [vmem:[#allocation7] sm:$0xff] %v124_v49 }
  0x4c   :  { %140 = vst [vmem:[#allocation7 + $0x8] sm:$0xff] %v125_v51 }
  0x4d   :  { %258 = shalt.err (!%p255_p0)
}
  0x4e   :  { %178 = dma.vmem_to_hbm [thread:$0]  %s173_s1, 256, %s313_s2, [#allocation4], %s274_s12, %s274_s12, %s275_s13  }
  0x4f   :  { %271 = dma.done.wait [#allocation4], 256  }
  0x50   :  { %272 = vsyncadd [#allocation4], 4294967040 }
  0x51   :  { %182 = vsyncpa [#allocation3], 1 }
  0x52   :  { %183 = vsyncpa [#allocation6], 1 }
  0x53   :  { %184 = vsyncpa [#allocation4], 1 }

</bundles_post_ra>
